<compile_context>
chip_gen: v5e
topology: v5e:2x2
jax: 0.10.0
libtpu: 0.0.40
codegen_flags: <defaults>
</compile_context>

<pallas_src>
import functools

import jax
import jax.numpy as jnp
from jax.experimental import pallas as pl
from jax.experimental.pallas import tpu as pltpu

BN_EPS = 1e-5
LANE = 128


# ------------------------------ Pallas kernel ------------------------------ #

def gcn_fused_kernel(x0_ref, srow_ref, scol_ref, norm_ref, invdeg_ref,
                     lin_w_ref, lin_b_ref, root_ref, eemb_ref,
                     gamma_ref, beta_ref, w1_ref, w2_ref, b_ref,
                     out_ref, *, num_layer):
    """num_layer x (GCNConv + BatchNorm1d + ReLU + residual) + edge predictor."""
    x = x0_ref[...]                                  # [N, Dp] f32
    srow = srow_ref[...]                             # [E, N]  bf16 one-hot(row)
    scol = scol_ref[...]                             # [N, E]  bf16 one-hot(col)
    num_edges, num_nodes = srow.shape
    dp = x.shape[1]

    # Structure-only terms (precomputed in f32 in the wrapper); broadcast once,
    # hoisted out of the layer loop (JAX does not CSE broadcast_in_dim).
    norm = jnp.broadcast_to(norm_ref[...], (num_edges, dp))        # [E, Dp]
    inv_deg = jnp.broadcast_to(invdeg_ref[...], (num_nodes, dp))   # [N, Dp]

    for l in range(num_layer):                       # static, unrolled
        # Linear: h = x @ W^T + b   (lin_w_ref already holds W^T, zero-padded)
        h = jnp.dot(x, lin_w_ref[l],
                    preferred_element_type=jnp.float32) + lin_b_ref[l]
        h_bf = h.astype(jnp.bfloat16)

        # gather x_j = h[row]: bf16 MXU matmul, f32 accumulation
        xj = jnp.dot(srow, h_bf, preferred_element_type=jnp.float32)   # [E, Dp]

        # message: norm * relu(x_j + edge_emb)
        msg = norm * jnp.maximum(xj + eemb_ref[l], 0.0)                # [E, Dp]

        # aggr='add' at target nodes (col): agg = onehot(col) @ msg
        agg = jnp.dot(scol, msg.astype(jnp.bfloat16),
                      preferred_element_type=jnp.float32)              # [N, Dp]

        # conv output: propagate(...) + relu(h + root_emb) / deg
        conv = agg + jnp.maximum(h + root_ref[l], 0.0) * inv_deg

        # BatchNorm1d (training-mode batch statistics, affine); elementwise
        # math kept in f32 (v5e VPU has no bf16 ALU).
        mu = jnp.mean(conv, axis=0, keepdims=True)
        var = jnp.mean((conv - mu) ** 2, axis=0, keepdims=True)
        bn = ((conv - mu) * jax.lax.rsqrt(var + BN_EPS)
              * gamma_ref[l] + beta_ref[l])

        # relu -> dropout (identity) -> residual add
        # TODO(synk): stochastic training-mode dropout not implemented
        # (exact for drop_ratio=0 / eval).
        x = jnp.maximum(bn, 0.0) + x

    # Edge predictor, reassociated: project nodes first ([N,1]), then gather
    # per edge -- avoids the [E,D]x[D,1] lane-width-1 matmuls of the naive form.
    p1 = jnp.dot(x, w1_ref[...], preferred_element_type=jnp.float32)   # [N, 1]
    p2 = jnp.dot(x, w2_ref[...], preferred_element_type=jnp.float32)   # [N, 1]
    pr = jnp.dot(srow.astype(jnp.float32), p1,
                 preferred_element_type=jnp.float32)                   # [E, 1]
    pc = jax.lax.dot_general(                                          # [E, 1]
        scol.astype(jnp.float32), p2,
        dimension_numbers=(((0,), (0,)), ((), ())),
        preferred_element_type=jnp.float32)
    out_ref[...] = pr + pc + b_ref[...]


# -------------------------------- wrappers --------------------------------- #

def _full_spec(shape):
    nd = len(shape)
    return pl.BlockSpec(shape, lambda i, _nd=nd: (0,) * _nd)


def _pad_to(a, shape):
    return jnp.pad(a, [(0, s - d) for d, s in zip(a.shape, shape)])


def init_gcn_params(key, emb_dim, num_layer):
    keys = jax.random.split(key, 3 + num_layer)
    params = {
        'atom_emb': 0.1 * jax.random.normal(keys[0], (16, emb_dim), jnp.float32),
        'edge_pred_w': 0.1 * jax.random.normal(keys[1], (1, 2 * emb_dim), jnp.float32),
        'edge_pred_b': 0.1 * jax.random.normal(keys[2], (1,), jnp.float32),
        'layers': [],
    }
    for i in range(num_layer):
        kk = jax.random.split(keys[3 + i], 6)
        params['layers'].append(dict(
            lin_w=0.1 * jax.random.normal(kk[0], (emb_dim, emb_dim), jnp.float32),  # [out,in]
            lin_b=0.1 * jax.random.normal(kk[1], (emb_dim,), jnp.float32),
            root=0.1 * jax.random.normal(kk[2], (1, emb_dim), jnp.float32),
            bond_emb=0.1 * jax.random.normal(kk[3], (4, emb_dim), jnp.float32),
            gamma=1.0 + 0.01 * jax.random.normal(kk[4], (emb_dim,), jnp.float32),
            beta=0.01 * jax.random.normal(kk[5], (emb_dim,), jnp.float32),
        ))
    return params


def gcn_forward(params, node_type, edge_index, edge_attr):
    N = node_type.shape[0]
    D = params['atom_emb'].shape[1]
    E = edge_index.shape[1]
    L = len(params['layers'])
    Dp = max(LANE, ((D + LANE - 1) // LANE) * LANE)   # lane-dense feature dim

    row, col = edge_index[0], edge_index[1]

    # glue: embedding lookups, bf16 one-hot gather/scatter matrices, and the
    # graph-structure-only deg / norm terms precomputed ONCE in f32.
    x0 = _pad_to(params['atom_emb'][node_type], (N, Dp))             # [N, Dp]
    srow = jax.nn.one_hot(row, N, dtype=jnp.bfloat16)                # [E, N]
    scol = jax.nn.one_hot(col, N, dtype=jnp.bfloat16, axis=0)        # [N, E]

    deg = jnp.zeros((N,), jnp.float32).at[row].add(1.0) + 1.0        # degree(row)+1
    dis = jnp.where(deg > 0.0, jax.lax.rsqrt(deg), 0.0)              # deg^-0.5 (inf->0)
    norm = (dis[row] * dis[col]).reshape(E, 1)                       # [E, 1]
    inv_deg = (1.0 / deg).reshape(N, 1)                              # [N, 1]

    # per-layer params, zero-padded to Dp lanes (padding stays exactly zero
    # through every layer, incl. BN since padded gamma/beta are zero) and
    # stacked over layers so one fused kernel sees them all.
    lys = params['layers']
    lin_w = jnp.stack([_pad_to(lp['lin_w'].T, (Dp, Dp)) for lp in lys])           # [L,Dp,Dp]
    lin_b = jnp.stack([_pad_to(lp['lin_b'].reshape(1, D), (1, Dp)) for lp in lys])
    root = jnp.stack([_pad_to(lp['root'], (1, Dp)) for lp in lys])
    eemb = jnp.stack([_pad_to(lp['bond_emb'][edge_attr], (E, Dp)) for lp in lys])  # [L,E,Dp]
    gamma = jnp.stack([_pad_to(lp['gamma'].reshape(1, D), (1, Dp)) for lp in lys])
    beta = jnp.stack([_pad_to(lp['beta'].reshape(1, D), (1, Dp)) for lp in lys])

    w = params['edge_pred_w']                                        # [1, 2D]
    w1 = _pad_to(w[:, :D].T, (Dp, 1))                                # [Dp, 1]
    w2 = _pad_to(w[:, D:].T, (Dp, 1))                                # [Dp, 1]
    b = params['edge_pred_b'].reshape(1, 1)

    inputs = (x0, srow, scol, norm, inv_deg,
              lin_w, lin_b, root, eemb, gamma, beta, w1, w2, b)

    # TODO(synk): for large graphs (N, E >> 1k) the dense one-hot formulation
    # is O(E*N) memory; switch to index-driven gather/scatter via
    # PrefetchScalarGridSpec + E-tile grid with a VMEM accumulator.
    return pl.pallas_call(
        functools.partial(gcn_fused_kernel, num_layer=L),
        out_shape=jax.ShapeDtypeStruct((E, 1), jnp.float32),
        grid=(1,),
        in_specs=[_full_spec(a.shape) for a in inputs],
        out_specs=_full_spec((E, 1)),
        compiler_params=pltpu.CompilerParams(
            dimension_semantics=("arbitrary",)),
    )(*inputs)


if __name__ == "__main__":
    key = jax.random.PRNGKey(0)
    emb_dim, num_layer, drop_ratio = 32, 2, 0.0
    N, E = 16, 24

    kp, kx, ke, ka = jax.random.split(key, 4)
    params = init_gcn_params(kp, emb_dim, num_layer)
    node_type = jax.random.randint(kx, (N,), 0, 16)           # graph.x
    edge_index = jax.random.randint(ke, (2, E), 0, N)         # graph.edge_index
    edge_attr = jax.random.randint(ka, (E,), 0, 4)            # graph.edge_attr

    out = gcn_forward(params, node_type, edge_index, edge_attr)
    jax.block_until_ready(out)
    assert out.shape == (E, 1) and out.dtype == jnp.float32
    print("KERNEL_OK")
</pallas_src>

<mosaic_0001>
module attributes {stable_mosaic.version = 11 : i64} {
  func.func @gcn_fused_kernel(%arg0: i32, %arg1: memref<16x128xf32, #tpu.memory_space<vmem>>, %arg2: memref<24x16xbf16, #tpu.memory_space<vmem>>, %arg3: memref<16x24xbf16, #tpu.memory_space<vmem>>, %arg4: memref<24x1xf32, #tpu.memory_space<vmem>>, %arg5: memref<16x1xf32, #tpu.memory_space<vmem>>, %arg6: memref<2x128x128xf32, #tpu.memory_space<vmem>>, %arg7: memref<2x1x128xf32, #tpu.memory_space<vmem>>, %arg8: memref<2x1x128xf32, #tpu.memory_space<vmem>>, %arg9: memref<2x24x128xf32, #tpu.memory_space<vmem>>, %arg10: memref<2x1x128xf32, #tpu.memory_space<vmem>>, %arg11: memref<2x1x128xf32, #tpu.memory_space<vmem>>, %arg12: memref<128x1xf32, #tpu.memory_space<vmem>>, %arg13: memref<128x1xf32, #tpu.memory_space<vmem>>, %arg14: memref<1x1xf32, #tpu.memory_space<vmem>>, %arg15: memref<24x1xf32, #tpu.memory_space<vmem>>) attributes {dimension_semantics = [#tpu.dimension_semantics<arbitrary>], iteration_bounds = array<i64: 1>, scalar_prefetch = 0 : i64, scratch_operands = 0 : i64, tpu.core_type = #tpu.core_type<tc>, window_params = [{pipeline_mode = #tpu.pipeline_mode<synchronous>, transform_indices = @transform_0, window_bounds = array<i64: 16, 128>}, {pipeline_mode = #tpu.pipeline_mode<synchronous>, transform_indices = @transform_1, window_bounds = array<i64: 24, 16>}, {pipeline_mode = #tpu.pipeline_mode<synchronous>, transform_indices = @transform_2, window_bounds = array<i64: 16, 24>}, {pipeline_mode = #tpu.pipeline_mode<synchronous>, transform_indices = @transform_3, window_bounds = array<i64: 24, 1>}, {pipeline_mode = #tpu.pipeline_mode<synchronous>, transform_indices = @transform_4, window_bounds = array<i64: 16, 1>}, {pipeline_mode = #tpu.pipeline_mode<synchronous>, transform_indices = @transform_5, window_bounds = array<i64: 2, 128, 128>}, {pipeline_mode = #tpu.pipeline_mode<synchronous>, transform_indices = @transform_6, window_bounds = array<i64: 2, 1, 128>}, {pipeline_mode = #tpu.pipeline_mode<synchronous>, transform_indices = @transform_7, window_bounds = array<i64: 2, 1, 128>}, {pipeline_mode = #tpu.pipeline_mode<synchronous>, transform_indices = @transform_8, window_bounds = array<i64: 2, 24, 128>}, {pipeline_mode = #tpu.pipeline_mode<synchronous>, transform_indices = @transform_9, window_bounds = array<i64: 2, 1, 128>}, {pipeline_mode = #tpu.pipeline_mode<synchronous>, transform_indices = @transform_10, window_bounds = array<i64: 2, 1, 128>}, {pipeline_mode = #tpu.pipeline_mode<synchronous>, transform_indices = @transform_11, window_bounds = array<i64: 128, 1>}, {pipeline_mode = #tpu.pipeline_mode<synchronous>, transform_indices = @transform_12, window_bounds = array<i64: 128, 1>}, {pipeline_mode = #tpu.pipeline_mode<synchronous>, transform_indices = @transform_13, window_bounds = array<i64: 1, 1>}, {pipeline_mode = #tpu.pipeline_mode<synchronous>, transform_indices = @transform_14, window_bounds = array<i64: 24, 1>}]} {
    %c0 = arith.constant 0 : index
    %c0_0 = arith.constant 0 : index
    %0 = vector.load %arg1[%c0, %c0_0] : memref<16x128xf32, #tpu.memory_space<vmem>>, vector<16x128xf32>
    %c0_1 = arith.constant 0 : index
    %c0_2 = arith.constant 0 : index
    %1 = vector.load %arg2[%c0_1, %c0_2] : memref<24x16xbf16, #tpu.memory_space<vmem>>, vector<24x16xbf16>
    %c0_3 = arith.constant 0 : index
    %c0_4 = arith.constant 0 : index
    %2 = vector.load %arg3[%c0_3, %c0_4] : memref<16x24xbf16, #tpu.memory_space<vmem>>, vector<16x24xbf16>
    %c0_5 = arith.constant 0 : index
    %c0_6 = arith.constant 0 : index
    %3 = vector.load %arg4[%c0_5, %c0_6] : memref<24x1xf32, #tpu.memory_space<vmem>>, vector<24x1xf32>
    %4 = vector.shape_cast %3 : vector<24x1xf32> to vector<24x1xf32>
    %5 = vector.broadcast %4 : vector<24x1xf32> to vector<24x128xf32>
    %c0_7 = arith.constant 0 : index
    %c0_8 = arith.constant 0 : index
    %6 = vector.load %arg5[%c0_7, %c0_8] : memref<16x1xf32, #tpu.memory_space<vmem>>, vector<16x1xf32>
    %7 = vector.shape_cast %6 : vector<16x1xf32> to vector<16x1xf32>
    %8 = vector.broadcast %7 : vector<16x1xf32> to vector<16x128xf32>
    %c0_9 = arith.constant 0 : index
    %c0_10 = arith.constant 0 : index
    %c0_11 = arith.constant 0 : index
    %9 = vector.load %arg6[%c0_9, %c0_10, %c0_11] : memref<2x128x128xf32, #tpu.memory_space<vmem>>, vector<1x128x128xf32>
    %10 = vector.shape_cast %9 : vector<1x128x128xf32> to vector<128x128xf32>
    %cst = arith.constant dense<0.000000e+00> : vector<16x128xf32>
    %11 = tpu.matmul %0, %10, %cst {dimension_numbers = #tpu.dot_dimension_numbers<[1], [0], [0], [1], [0, 0, 1, 1], [], []>} : vector<16x128xf32>, vector<128x128xf32>, vector<16x128xf32> -> vector<16x128xf32>
    %c0_12 = arith.constant 0 : index
    %c0_13 = arith.constant 0 : index
    %c0_14 = arith.constant 0 : index
    %12 = vector.load %arg7[%c0_12, %c0_13, %c0_14] : memref<2x1x128xf32, #tpu.memory_space<vmem>>, vector<1x1x128xf32>
    %13 = vector.shape_cast %12 : vector<1x1x128xf32> to vector<1x128xf32>
    %14 = vector.broadcast %13 : vector<1x128xf32> to vector<16x128xf32>
    %15 = arith.addf %11, %14 : vector<16x128xf32>
    %16 = arith.truncf %15 : vector<16x128xf32> to vector<16x128xbf16>
    %cst_15 = arith.constant dense<0.000000e+00> : vector<24x128xf32>
    %17 = tpu.matmul %1, %16, %cst_15 {dimension_numbers = #tpu.dot_dimension_numbers<[1], [0], [0], [1], [0, 0, 1, 1], [], []>} : vector<24x16xbf16>, vector<16x128xbf16>, vector<24x128xf32> -> vector<24x128xf32>
    %c0_16 = arith.constant 0 : index
    %c0_17 = arith.constant 0 : index
    %c0_18 = arith.constant 0 : index
    %18 = vector.load %arg9[%c0_16, %c0_17, %c0_18] : memref<2x24x128xf32, #tpu.memory_space<vmem>>, vector<1x24x128xf32>
    %19 = vector.shape_cast %18 : vector<1x24x128xf32> to vector<24x128xf32>
    %20 = arith.addf %17, %19 : vector<24x128xf32>
    %cst_19 = arith.constant 0.000000e+00 : f32
    %21 = vector.broadcast %cst_19 : f32 to vector<24x128xf32>
    %22 = arith.maximumf %20, %21 : vector<24x128xf32>
    %23 = arith.mulf %5, %22 : vector<24x128xf32>
    %24 = arith.truncf %23 : vector<24x128xf32> to vector<24x128xbf16>
    %cst_20 = arith.constant dense<0.000000e+00> : vector<16x128xf32>
    %25 = tpu.matmul %2, %24, %cst_20 {dimension_numbers = #tpu.dot_dimension_numbers<[1], [0], [0], [1], [0, 0, 1, 1], [], []>} : vector<16x24xbf16>, vector<24x128xbf16>, vector<16x128xf32> -> vector<16x128xf32>
    %c0_21 = arith.constant 0 : index
    %c0_22 = arith.constant 0 : index
    %c0_23 = arith.constant 0 : index
    %26 = vector.load %arg8[%c0_21, %c0_22, %c0_23] : memref<2x1x128xf32, #tpu.memory_space<vmem>>, vector<1x1x128xf32>
    %27 = vector.shape_cast %26 : vector<1x1x128xf32> to vector<1x128xf32>
    %28 = vector.broadcast %27 : vector<1x128xf32> to vector<16x128xf32>
    %29 = arith.addf %15, %28 : vector<16x128xf32>
    %cst_24 = arith.constant 0.000000e+00 : f32
    %30 = vector.broadcast %cst_24 : f32 to vector<16x128xf32>
    %31 = arith.maximumf %29, %30 : vector<16x128xf32>
    %32 = arith.mulf %31, %8 : vector<16x128xf32>
    %33 = arith.addf %25, %32 : vector<16x128xf32>
    %cst_25 = arith.constant dense<0.000000e+00> : vector<128xf32>
    %34 = vector.multi_reduction <add>, %33, %cst_25 [0] : vector<16x128xf32> to vector<128xf32>
    %35 = vector.shape_cast %34 : vector<128xf32> to vector<1x128xf32>
    %cst_26 = arith.constant 1.600000e+01 : f32
    %36 = vector.broadcast %cst_26 : f32 to vector<1x128xf32>
    %37 = arith.divf %35, %36 : vector<1x128xf32>
    %38 = vector.broadcast %37 : vector<1x128xf32> to vector<16x128xf32>
    %39 = arith.subf %33, %38 : vector<16x128xf32>
    %40 = arith.mulf %39, %39 : vector<16x128xf32>
    %cst_27 = arith.constant dense<0.000000e+00> : vector<128xf32>
    %41 = vector.multi_reduction <add>, %40, %cst_27 [0] : vector<16x128xf32> to vector<128xf32>
    %42 = vector.shape_cast %41 : vector<128xf32> to vector<1x128xf32>
    %cst_28 = arith.constant 1.600000e+01 : f32
    %43 = vector.broadcast %cst_28 : f32 to vector<1x128xf32>
    %44 = arith.divf %42, %43 : vector<1x128xf32>
    %45 = vector.broadcast %37 : vector<1x128xf32> to vector<16x128xf32>
    %46 = arith.subf %33, %45 : vector<16x128xf32>
    %cst_29 = arith.constant 9.99999974E-6 : f32
    %47 = vector.broadcast %cst_29 : f32 to vector<1x128xf32>
    %48 = arith.addf %44, %47 : vector<1x128xf32>
    %49 = math.rsqrt %48 : vector<1x128xf32>
    %50 = vector.broadcast %49 : vector<1x128xf32> to vector<16x128xf32>
    %51 = arith.mulf %46, %50 : vector<16x128xf32>
    %c0_30 = arith.constant 0 : index
    %c0_31 = arith.constant 0 : index
    %c0_32 = arith.constant 0 : index
    %52 = vector.load %arg10[%c0_30, %c0_31, %c0_32] : memref<2x1x128xf32, #tpu.memory_space<vmem>>, vector<1x1x128xf32>
    %53 = vector.shape_cast %52 : vector<1x1x128xf32> to vector<1x128xf32>
    %54 = vector.broadcast %53 : vector<1x128xf32> to vector<16x128xf32>
    %55 = arith.mulf %51, %54 : vector<16x128xf32>
    %c0_33 = arith.constant 0 : index
    %c0_34 = arith.constant 0 : index
    %c0_35 = arith.constant 0 : index
    %56 = vector.load %arg11[%c0_33, %c0_34, %c0_35] : memref<2x1x128xf32, #tpu.memory_space<vmem>>, vector<1x1x128xf32>
    %57 = vector.shape_cast %56 : vector<1x1x128xf32> to vector<1x128xf32>
    %58 = vector.broadcast %57 : vector<1x128xf32> to vector<16x128xf32>
    %59 = arith.addf %55, %58 : vector<16x128xf32>
    %cst_36 = arith.constant 0.000000e+00 : f32
    %60 = vector.broadcast %cst_36 : f32 to vector<16x128xf32>
    %61 = arith.maximumf %59, %60 : vector<16x128xf32>
    %62 = arith.addf %61, %0 : vector<16x128xf32>
    %c1 = arith.constant 1 : index
    %c0_37 = arith.constant 0 : index
    %c0_38 = arith.constant 0 : index
    %63 = vector.load %arg6[%c1, %c0_37, %c0_38] : memref<2x128x128xf32, #tpu.memory_space<vmem>>, vector<1x128x128xf32>
    %64 = vector.shape_cast %63 : vector<1x128x128xf32> to vector<128x128xf32>
    %cst_39 = arith.constant dense<0.000000e+00> : vector<16x128xf32>
    %65 = tpu.matmul %62, %64, %cst_39 {dimension_numbers = #tpu.dot_dimension_numbers<[1], [0], [0], [1], [0, 0, 1, 1], [], []>} : vector<16x128xf32>, vector<128x128xf32>, vector<16x128xf32> -> vector<16x128xf32>
    %c1_40 = arith.constant 1 : index
    %c0_41 = arith.constant 0 : index
    %c0_42 = arith.constant 0 : index
    %66 = vector.load %arg7[%c1_40, %c0_41, %c0_42] : memref<2x1x128xf32, #tpu.memory_space<vmem>>, vector<1x1x128xf32>
    %67 = vector.shape_cast %66 : vector<1x1x128xf32> to vector<1x128xf32>
    %68 = vector.broadcast %67 : vector<1x128xf32> to vector<16x128xf32>
    %69 = arith.addf %65, %68 : vector<16x128xf32>
    %70 = arith.truncf %69 : vector<16x128xf32> to vector<16x128xbf16>
    %cst_43 = arith.constant dense<0.000000e+00> : vector<24x128xf32>
    %71 = tpu.matmul %1, %70, %cst_43 {dimension_numbers = #tpu.dot_dimension_numbers<[1], [0], [0], [1], [0, 0, 1, 1], [], []>} : vector<24x16xbf16>, vector<16x128xbf16>, vector<24x128xf32> -> vector<24x128xf32>
    %c1_44 = arith.constant 1 : index
    %c0_45 = arith.constant 0 : index
    %c0_46 = arith.constant 0 : index
    %72 = vector.load %arg9[%c1_44, %c0_45, %c0_46] : memref<2x24x128xf32, #tpu.memory_space<vmem>>, vector<1x24x128xf32>
    %73 = vector.shape_cast %72 : vector<1x24x128xf32> to vector<24x128xf32>
    %74 = arith.addf %71, %73 : vector<24x128xf32>
    %cst_47 = arith.constant 0.000000e+00 : f32
    %75 = vector.broadcast %cst_47 : f32 to vector<24x128xf32>
    %76 = arith.maximumf %74, %75 : vector<24x128xf32>
    %77 = arith.mulf %5, %76 : vector<24x128xf32>
    %78 = arith.truncf %77 : vector<24x128xf32> to vector<24x128xbf16>
    %cst_48 = arith.constant dense<0.000000e+00> : vector<16x128xf32>
    %79 = tpu.matmul %2, %78, %cst_48 {dimension_numbers = #tpu.dot_dimension_numbers<[1], [0], [0], [1], [0, 0, 1, 1], [], []>} : vector<16x24xbf16>, vector<24x128xbf16>, vector<16x128xf32> -> vector<16x128xf32>
    %c1_49 = arith.constant 1 : index
    %c0_50 = arith.constant 0 : index
    %c0_51 = arith.constant 0 : index
    %80 = vector.load %arg8[%c1_49, %c0_50, %c0_51] : memref<2x1x128xf32, #tpu.memory_space<vmem>>, vector<1x1x128xf32>
    %81 = vector.shape_cast %80 : vector<1x1x128xf32> to vector<1x128xf32>
    %82 = vector.broadcast %81 : vector<1x128xf32> to vector<16x128xf32>
    %83 = arith.addf %69, %82 : vector<16x128xf32>
    %cst_52 = arith.constant 0.000000e+00 : f32
    %84 = vector.broadcast %cst_52 : f32 to vector<16x128xf32>
    %85 = arith.maximumf %83, %84 : vector<16x128xf32>
    %86 = arith.mulf %85, %8 : vector<16x128xf32>
    %87 = arith.addf %79, %86 : vector<16x128xf32>
    %cst_53 = arith.constant dense<0.000000e+00> : vector<128xf32>
    %88 = vector.multi_reduction <add>, %87, %cst_53 [0] : vector<16x128xf32> to vector<128xf32>
    %89 = vector.shape_cast %88 : vector<128xf32> to vector<1x128xf32>
    %cst_54 = arith.constant 1.600000e+01 : f32
    %90 = vector.broadcast %cst_54 : f32 to vector<1x128xf32>
    %91 = arith.divf %89, %90 : vector<1x128xf32>
    %92 = vector.broadcast %91 : vector<1x128xf32> to vector<16x128xf32>
    %93 = arith.subf %87, %92 : vector<16x128xf32>
    %94 = arith.mulf %93, %93 : vector<16x128xf32>
    %cst_55 = arith.constant dense<0.000000e+00> : vector<128xf32>
    %95 = vector.multi_reduction <add>, %94, %cst_55 [0] : vector<16x128xf32> to vector<128xf32>
    %96 = vector.shape_cast %95 : vector<128xf32> to vector<1x128xf32>
    %cst_56 = arith.constant 1.600000e+01 : f32
    %97 = vector.broadcast %cst_56 : f32 to vector<1x128xf32>
    %98 = arith.divf %96, %97 : vector<1x128xf32>
    %99 = vector.broadcast %91 : vector<1x128xf32> to vector<16x128xf32>
    %100 = arith.subf %87, %99 : vector<16x128xf32>
    %cst_57 = arith.constant 9.99999974E-6 : f32
    %101 = vector.broadcast %cst_57 : f32 to vector<1x128xf32>
    %102 = arith.addf %98, %101 : vector<1x128xf32>
    %103 = math.rsqrt %102 : vector<1x128xf32>
    %104 = vector.broadcast %103 : vector<1x128xf32> to vector<16x128xf32>
    %105 = arith.mulf %100, %104 : vector<16x128xf32>
    %c1_58 = arith.constant 1 : index
    %c0_59 = arith.constant 0 : index
    %c0_60 = arith.constant 0 : index
    %106 = vector.load %arg10[%c1_58, %c0_59, %c0_60] : memref<2x1x128xf32, #tpu.memory_space<vmem>>, vector<1x1x128xf32>
    %107 = vector.shape_cast %106 : vector<1x1x128xf32> to vector<1x128xf32>
    %108 = vector.broadcast %107 : vector<1x128xf32> to vector<16x128xf32>
    %109 = arith.mulf %105, %108 : vector<16x128xf32>
    %c1_61 = arith.constant 1 : index
    %c0_62 = arith.constant 0 : index
    %c0_63 = arith.constant 0 : index
    %110 = vector.load %arg11[%c1_61, %c0_62, %c0_63] : memref<2x1x128xf32, #tpu.memory_space<vmem>>, vector<1x1x128xf32>
    %111 = vector.shape_cast %110 : vector<1x1x128xf32> to vector<1x128xf32>
    %112 = vector.broadcast %111 : vector<1x128xf32> to vector<16x128xf32>
    %113 = arith.addf %109, %112 : vector<16x128xf32>
    %cst_64 = arith.constant 0.000000e+00 : f32
    %114 = vector.broadcast %cst_64 : f32 to vector<16x128xf32>
    %115 = arith.maximumf %113, %114 : vector<16x128xf32>
    %116 = arith.addf %115, %62 : vector<16x128xf32>
    %c0_65 = arith.constant 0 : index
    %c0_66 = arith.constant 0 : index
    %117 = vector.load %arg12[%c0_65, %c0_66] : memref<128x1xf32, #tpu.memory_space<vmem>>, vector<128x1xf32>
    %cst_67 = arith.constant dense<0.000000e+00> : vector<16x1xf32>
    %118 = tpu.matmul %116, %117, %cst_67 {dimension_numbers = #tpu.dot_dimension_numbers<[1], [0], [0], [1], [0, 0, 1, 1], [], []>} : vector<16x128xf32>, vector<128x1xf32>, vector<16x1xf32> -> vector<16x1xf32>
    %c0_68 = arith.constant 0 : index
    %c0_69 = arith.constant 0 : index
    %119 = vector.load %arg13[%c0_68, %c0_69] : memref<128x1xf32, #tpu.memory_space<vmem>>, vector<128x1xf32>
    %cst_70 = arith.constant dense<0.000000e+00> : vector<16x1xf32>
    %120 = tpu.matmul %116, %119, %cst_70 {dimension_numbers = #tpu.dot_dimension_numbers<[1], [0], [0], [1], [0, 0, 1, 1], [], []>} : vector<16x128xf32>, vector<128x1xf32>, vector<16x1xf32> -> vector<16x1xf32>
    %121 = arith.extf %1 : vector<24x16xbf16> to vector<24x16xf32>
    %cst_71 = arith.constant dense<0.000000e+00> : vector<24x1xf32>
    %122 = tpu.matmul %121, %118, %cst_71 {dimension_numbers = #tpu.dot_dimension_numbers<[1], [0], [0], [1], [0, 0, 1, 1], [], []>} : vector<24x16xf32>, vector<16x1xf32>, vector<24x1xf32> -> vector<24x1xf32>
    %123 = arith.extf %2 : vector<16x24xbf16> to vector<16x24xf32>
    %cst_72 = arith.constant dense<0.000000e+00> : vector<24x1xf32>
    %124 = tpu.matmul %123, %120, %cst_72 {dimension_numbers = #tpu.dot_dimension_numbers<[0], [0], [1], [1], [0, 1, 1, 1], [], []>} : vector<16x24xf32>, vector<16x1xf32>, vector<24x1xf32> -> vector<24x1xf32>
    %125 = arith.addf %122, %124 : vector<24x1xf32>
    %c0_73 = arith.constant 0 : index
    %c0_74 = arith.constant 0 : index
    %126 = vector.load %arg14[%c0_73, %c0_74] : memref<1x1xf32, #tpu.memory_space<vmem>>, vector<1x1xf32>
    %127 = vector.broadcast %126 : vector<1x1xf32> to vector<24x1xf32>
    %128 = arith.addf %125, %127 : vector<24x1xf32>
    %c0_75 = arith.constant 0 : index
    %c0_76 = arith.constant 0 : index
    %129 = vector.load %arg15[%c0_75, %c0_76] : memref<24x1xf32, #tpu.memory_space<vmem>>, vector<24x1xf32>
    tpu.vector_store %arg15[%c0_75, %c0_76], %128 {strides = array<i32>} : memref<24x1xf32, #tpu.memory_space<vmem>>, vector<24x1xf32>,
    return
  }
  func.func @transform_0(%arg0: i32) -> (i32, i32) {
    %c0_i32 = arith.constant 0 : i32
    %c0_i32_0 = arith.constant 0 : i32
    %c0_i32_1 = arith.constant 0 : i32
    return %c0_i32, %c0_i32_0 : i32, i32
  }
  func.func @transform_1(%arg0: i32) -> (i32, i32) {
    %c0_i32 = arith.constant 0 : i32
    %c0_i32_0 = arith.constant 0 : i32
    %c0_i32_1 = arith.constant 0 : i32
    return %c0_i32, %c0_i32_0 : i32, i32
  }
  func.func @transform_2(%arg0: i32) -> (i32, i32) {
    %c0_i32 = arith.constant 0 : i32
    %c0_i32_0 = arith.constant 0 : i32
    %c0_i32_1 = arith.constant 0 : i32
    return %c0_i32, %c0_i32_0 : i32, i32
  }
  func.func @transform_3(%arg0: i32) -> (i32, i32) {
    %c0_i32 = arith.constant 0 : i32
    %c0_i32_0 = arith.constant 0 : i32
    %c0_i32_1 = arith.constant 0 : i32
    return %c0_i32, %c0_i32_0 : i32, i32
  }
  func.func @transform_4(%arg0: i32) -> (i32, i32) {
    %c0_i32 = arith.constant 0 : i32
    %c0_i32_0 = arith.constant 0 : i32
    %c0_i32_1 = arith.constant 0 : i32
    return %c0_i32, %c0_i32_0 : i32, i32
  }
  func.func @transform_5(%arg0: i32) -> (i32, i32, i32) {
    %c0_i32 = arith.constant 0 : i32
    %c0_i32_0 = arith.constant 0 : i32
    %c0_i32_1 = arith.constant 0 : i32
    %c0_i32_2 = arith.constant 0 : i32
    return %c0_i32, %c0_i32_0, %c0_i32_1 : i32, i32, i32
  }
  func.func @transform_6(%arg0: i32) -> (i32, i32, i32) {
    %c0_i32 = arith.constant 0 : i32
    %c0_i32_0 = arith.constant 0 : i32
    %c0_i32_1 = arith.constant 0 : i32
    %c0_i32_2 = arith.constant 0 : i32
    return %c0_i32, %c0_i32_0, %c0_i32_1 : i32, i32, i32
  }
  func.func @transform_7(%arg0: i32) -> (i32, i32, i32) {
    %c0_i32 = arith.constant 0 : i32
    %c0_i32_0 = arith.constant 0 : i32
    %c0_i32_1 = arith.constant 0 : i32
    %c0_i32_2 = arith.constant 0 : i32
    return %c0_i32, %c0_i32_0, %c0_i32_1 : i32, i32, i32
  }
  func.func @transform_8(%arg0: i32) -> (i32, i32, i32) {
    %c0_i32 = arith.constant 0 : i32
    %c0_i32_0 = arith.constant 0 : i32
    %c0_i32_1 = arith.constant 0 : i32
    %c0_i32_2 = arith.constant 0 : i32
    return %c0_i32, %c0_i32_0, %c0_i32_1 : i32, i32, i32
  }
  func.func @transform_9(%arg0: i32) -> (i32, i32, i32) {
    %c0_i32 = arith.constant 0 : i32
    %c0_i32_0 = arith.constant 0 : i32
    %c0_i32_1 = arith.constant 0 : i32
    %c0_i32_2 = arith.constant 0 : i32
    return %c0_i32, %c0_i32_0, %c0_i32_1 : i32, i32, i32
  }
  func.func @transform_10(%arg0: i32) -> (i32, i32, i32) {
    %c0_i32 = arith.constant 0 : i32
    %c0_i32_0 = arith.constant 0 : i32
    %c0_i32_1 = arith.constant 0 : i32
    %c0_i32_2 = arith.constant 0 : i32
    return %c0_i32, %c0_i32_0, %c0_i32_1 : i32, i32, i32
  }
  func.func @transform_11(%arg0: i32) -> (i32, i32) {
    %c0_i32 = arith.constant 0 : i32
    %c0_i32_0 = arith.constant 0 : i32
    %c0_i32_1 = arith.constant 0 : i32
    return %c0_i32, %c0_i32_0 : i32, i32
  }
  func.func @transform_12(%arg0: i32) -> (i32, i32) {
    %c0_i32 = arith.constant 0 : i32
    %c0_i32_0 = arith.constant 0 : i32
    %c0_i32_1 = arith.constant 0 : i32
    return %c0_i32, %c0_i32_0 : i32, i32
  }
  func.func @transform_13(%arg0: i32) -> (i32, i32) {
    %c0_i32 = arith.constant 0 : i32
    %c0_i32_0 = arith.constant 0 : i32
    %c0_i32_1 = arith.constant 0 : i32
    return %c0_i32, %c0_i32_0 : i32, i32
  }
  func.func @transform_14(%arg0: i32) -> (i32, i32) {
    %c0_i32 = arith.constant 0 : i32
    %c0_i32_0 = arith.constant 0 : i32
    %c0_i32_1 = arith.constant 0 : i32
    return %c0_i32, %c0_i32_0 : i32, i32
  }
}

</mosaic_0001>

<bundles_post_ra>
// kernel: tpu_custom_call.1
= control target key start
LH: loop header
LB: loop body
LE: loop exit
PB: predicated region body
PF: predicated region fallthrough
CT: control target
= control target key end

     0   :  { %s1161_s0 = inlined_call_operand.vmem [shape: f32[16,128], index: 0, kind: input, shape index: {}]   ;;  %s1162_s1 = inlined_call_operand.vmem [shape: bf16[24,16], index: 1, kind: input, shape index: {}]   ;;  %s1163_s2 = inlined_call_operand.vmem [shape: bf16[16,24], index: 2, kind: input, shape index: {}]   ;;  %s1164_s3 = inlined_call_operand.vmem [shape: f32[24,1], index: 3, kind: input, shape index: {}]   ;;  %s1165_s4 = inlined_call_operand.vmem [shape: f32[16,1], index: 4, kind: input, shape index: {}]   ;;  %s1166_s5 = inlined_call_operand.vmem [shape: f32[2,128,128], index: 5, kind: input, shape index: {}]   ;;  %s1167_s6 = inlined_call_operand.vmem [shape: f32[2,1,128], index: 6, kind: input, shape index: {}]   ;;  %s1168_s7 = inlined_call_operand.vmem [shape: f32[2,1,128], index: 7, kind: input, shape index: {}]   ;;  %s1169_s8 = inlined_call_operand.hbm [shape: f32[2,24,128], index: 8, kind: input, shape index: {}]   ;;  %s1170_s9 = inlined_call_operand.vmem [shape: f32[2,1,128], index: 9, kind: input, shape index: {}]   ;;  %s1171_s10 = inlined_call_operand.vmem [shape: f32[2,1,128], index: 10, kind: input, shape index: {}]   ;;  %s1172_s11 = inlined_call_operand.vmem [shape: f32[128,1], index: 11, kind: input, shape index: {}]   ;;  %s1173_s12 = inlined_call_operand.vmem [shape: f32[128,1], index: 12, kind: input, shape index: {}]   ;;  %s1174_s13 = inlined_call_operand.<no memory space> [shape: f32[1,1], index: 13, kind: input, shape index: {}]   ;;  %s1175_s14 = inlined_call_operand.vmem [shape: f32[24,1], index: 14, kind: output, shape index: {}]  }
   0x1   :  { %v19_v0 = vstv %s1174_s13 }
   0x2   :  { %20 = vst [vmem:[#allocation2] sm:$0x1] %v19_v0 }
   0x3   :  { %21 = vsyncpa [#allocation4], 0  ;;  %s42_s17 = sshll.u32 %s1169_s8, 4  ;;  %s732_s18 = smov [#allocation3]   ;;  %s43_s17 = int_to_ptr.hbm [resolvable:$true] %s42_s17 }
   0x4   :  { %s44_s19 = sshll.u32 %s732_s18, 4  ;;  %s733_s20 = smov 128   ;;  %s45_s19 = int_to_ptr.vmem [resolvable:$true] %s44_s19 }
   0x5   :  { %s734_s21 = smov 8  }
   0x6   :  { %50 = dma.hbm_to_vmem [thread:$0]  %s43_s17, 768, %s45_s19, [#allocation4], %s733_s20, %s733_s20, %s734_s21  }
   0x7   :  { %730 = dma.done.wait [#allocation4], 768  }
   0x8   :  { %731 = vsyncadd [#allocation4], 4294966528  ;;  %v118_v1 = vld [vmem:[%s1166_s5 + $0x78] sm:$0xff]  ;;  %v117_v2 = vld [vmem:[%s1166_s5 + $0x70] sm:$0xff]  ;;  %v735_v3 = vmov 0   ;;  %vm158_vm0 = vcmask 130048  }
   0x9   :  { %123 = vmatpush.msra.mxu0 %v118_v1  ;;  %689 = vset.pattern.permute.xlu1 %v735_v3  ;;  %v116_v4 = vld [vmem:[%s1166_s5 + $0x68] sm:$0xff]  ;;  %v115_v5 = vld [vmem:[%s1166_s5 + $0x60] sm:$0xff]  ;;  %v114_v6 = vld [vmem:[%s1166_s5 + $0x58] sm:$0xff]  ;;  %vm210_vm1 = vcmask 1043456   ;;  %vm206_vm2 = vcmask 195584   ;;  %v736_v59 = vmov 16.0  }
   0xa   :  { %690 = vset.pattern.permute.xlu2 %v735_v3  ;;  %688 = vset.pattern.permute.xlu0 %v735_v3  ;;  %v113_v7 = vld [vmem:[%s1166_s5 + $0x50] sm:$0xff]  ;;  %v74_v8 = vld [vmem:[%s1164_s3 + $0x8] sm:$0xff]  ;;  %v111_v11 = vld [vmem:[%s1166_s5 + $0x40] sm:$0xff]  ;;  %700 = vrcp.f32 %v736_v59  ;;  %vm631_vm10 = vcmask 7168  }
   0xb   :  { %124 = vmatpush.msra.mxu0 %v117_v2  ;;  %v92_v9 = vld [vmem:[%s1165_s4 + $0x8] sm:$0xff]  ;;  %83 = vperm.xlu1 %689, %v74_v8   ;;  %v110_v12 = vld [vmem:[%s1166_s5 + $0x38] sm:$0xff]  ;;  %v91_v13 = vld [vmem:[%s1165_s4] sm:$0xff] }
   0xc   :  { %v112_v10 = vld [vmem:[%s1166_s5 + $0x48] sm:$0xff]  ;;  %100 = vperm.xlu2 %690, %v92_v9   ;;  %v109_v14 = vld [vmem:[%s1166_s5 + $0x30] sm:$0xff]  ;;  %v107_v16 = vld [vmem:[%s1166_s5 + $0x20] sm:$0xff] }
   0xd   :  { %125 = vmatpush.msra.mxu0 %v116_v4  ;;  %v108_v15 = vld [vmem:[%s1166_s5 + $0x28] sm:$0xff]  ;;  %v106_v17 = vld [vmem:[%s1166_s5 + $0x18] sm:$0xff]  ;;  %v105_v18 = vld [vmem:[%s1166_s5 + $0x10] sm:$0xff] }
   0xe   :  { %v104_v19 = vld [vmem:[%s1166_s5 + $0x8] sm:$0xff]  ;;  %v103_v20 = vld [vmem:[%s1166_s5] sm:$0xff]  ;;  %v75_v23 = vld [vmem:[%s1164_s3 + $0x10] sm:$0xff] }
   0xf   :  { %126 = vmatpush.msra.mxu0 %v115_v5  ;;  %v878_v21 = vld [vmem:[%s1161_s0] sm:$0xff]  ;;  %v884_v22 = vld [vmem:[%s1161_s0 + $0x8] sm:$0xff]  ;;  %88 = vperm.xlu0 %688, %v75_v23   ;;  %v149_v39 = vld [vmem:[#allocation3 + $0x10] sm:$0xff] }
  0x10   :  { %v73_v24 = vld [vmem:[%s1164_s3] sm:$0xff]  ;;  %v906_v32 = vld [vmem:[%s1162_s1 + $0x8] sm:$0xf]  ;;  %v701_v63 = vpop.eup %700 }
  0x11   :  { %127 = vmatpush.msra.mxu0 %v114_v6  ;;  %v691_v26 = vld [vmem:[%s1167_s6] ss:$0 sm:$0xff]  ;;  %v155_v33 = vunpack.c.l.b16 %v906_v32  ;;  %v148_v38 = vld [vmem:[#allocation3 + $0x8] sm:$0xff]  ;;  %v147_v40 = vld [vmem:[#allocation3] sm:$0xff]  ;;  %v236_v4 = vmul.f32 16.0, %v701_v63  ;;  %vm240_vm3 = vweird.f32 %v701_v63 }
  0x12   :  { %v899_v31 = vld [vmem:[%s1162_s1] sm:$0xff] }
  0x13   :  { %128 = vmatpush.msra.mxu0 %v113_v7  ;;  %95 = vperm.xlu1 %689, %v91_v13   ;;  %v909_v34 = vpack.c.b16 %v155_v33, %v155_v33  ;;  %v926_v57 = vld [vmem:[%s1163_s2] sm:$0xff]  ;;  %v666_v13 = vld [vmem:[%s1166_s5 + $0xf8] sm:$0xff] }
  0x14   :  { %v692_v58 = vld [vmem:[%s1168_s7] ss:$0 sm:$0xff]  ;;  %306 = vmatpush.msra.mxu3 %v666_v13 }
  0x15   :  { %129 = vmatpush.msra.mxu0 %v112_v10  ;;  %v237_v10 = vsub.f32 1.0, %v236_v4  ;;  %v663_v23 = vld [vmem:[%s1166_s5 + $0xe0] sm:$0xff] }
  0x16   :  { %v693_v4 = vld [vmem:[%s1170_s9] ss:$0 sm:$0xff] }
  0x17   :  { %130 = vmatpush.msra.mxu0 %v111_v11  ;;  %78 = vperm.xlu0 %688, %v73_v24  }
  0x19   :  { %131 = vmatpush.msra.mxu0 %v110_v12 }
  0x1b   :  { %132 = vmatpush.msra.mxu0 %v109_v14  ;;  %v238_v14 = vmul.f32 %v701_v63, %v237_v10 }
  0x1d   :  { %133 = vmatpush.msra.mxu0 %v108_v15 }
  0x1f   :  { %134 = vmatpush.msra.mxu0 %v107_v16  ;;  %v665_v16 = vld [vmem:[%s1166_s5 + $0xf0] sm:$0xff] }
  0x20   :  { %307 = vmatpush.msra.mxu3 %v665_v16 }
  0x21   :  { %135 = vmatpush.msra.mxu0 %v106_v17 }
  0x23   :  { %136 = vmatpush.msra.mxu0 %v105_v18  ;;  %v664_v18 = vld [vmem:[%s1166_s5 + $0xe8] sm:$0xff] }
  0x24   :  { %308 = vmatpush.msra.mxu3 %v664_v18  ;;  %v695_v18 = vld [vmem:[%s1167_s6 + $0x1] ss:$0 sm:$0xff] }
  0x25   :  { %137 = vmatpush.msra.mxu0 %v104_v19  ;;  %v239_v19 = vadd.f32 %v701_v63, %v238_v14 }
  0x26   :  { %309 = vmatpush.msra.mxu3 %v663_v23 }
  0x27   :  { %138 = vmatpush.msra.mxu0 %v103_v20 }
  0x28   :  { %139 = vmatmul.f32.vlgmr.msra.gmra.mxu0 %v878_v21 }
  0x30   :  { %142 = vmatmul.f32.gmra.mxu0 %v884_v22 }
  0x66   :  { %v935_v3 = vpop.permute.xlu2 %100 }
  0x7d   :  { %v916_v49 = vpop.permute.xlu1 %83 }
  0x81   :  { %v913_v37 = vpop.permute.xlu0 %88 }
  0x85   :  { %v933_v2 = vpop.permute.xlu1 %95 }
  0x89   :  { %v918_v50 = vpop.permute.xlu0 %78 }
  0xa5   :  { %v140_v25 = vpop.f32.mrf.mxu0 }
  0xa6   :  { %v141_v28 = vadd.f32 %v691_v26, %v140_v25  ;;  %v662_v25 = vld [vmem:[%s1166_s5 + $0xd8] sm:$0xff] }
  0xa7   :  { %310 = vmatpush.msra.mxu3 %v662_v25  ;;  %v332_v25 = vld [vmem:[#allocation3 + $0x20] sm:$0xff] }
  0xa8   :  { %v195_v60 = vadd.f32 %v692_v58, %v141_v28 }
  0xaa   :  { %v197_v0 = vmax.f32 %v195_v60, 0.0 }
  0xac   :  { %v199_v5 = vmul.f32 %v197_v0, %v933_v2 }
  0xad   :  { %v143_v27 = vpop.f32.mrf.mxu0 }
  0xae   :  { %v144_v29 = vadd.f32 %v691_v26, %v143_v27  ;;  %v954_v26 = vsel %vm240_vm3, %v701_v63, %v239_v19 }
  0xb0   :  { %v146_v30 = vpack.c.bf16 %v144_v29, %v141_v28  ;;  %v196_v61 = vadd.f32 %v692_v58, %v144_v29  ;;  %v661_v28 = vld [vmem:[%s1166_s5 + $0xd0] sm:$0xff] }
  0xb1   :  { %311 = vmatpush.msra.mxu3 %v661_v28  ;;  %v331_v28 = vld [vmem:[#allocation3 + $0x18] sm:$0xff] }
  0xb2   :  { %172 = vmatpush.bf16.msra.mxu1 %v146_v30  ;;  %v198_v1 = vmax.f32 %v196_v61, 0.0  ;;  %v660_v30 = vld [vmem:[%s1166_s5 + $0xc8] sm:$0xff] }
  0xb3   :  { %312 = vmatpush.msra.mxu3 %v660_v30 }
  0xb4   :  { %v200_v6 = vmul.f32 %v198_v1, %v935_v3 }
  0xb5   :  { %644 = vmatmul.msk.bf16.vlgmr.msra.gmra.mxu1 %vm158_vm0, %v899_v31 }
  0xc5   :  { %645 = vmatmul.msk.bf16.gmra.mxu1 %vm158_vm0, %v909_v34 }
 0x132   :  { %v174_v35 = vpop.f32.mrf.mxu1 }
 0x133   :  { %v175_v44 = vadd.f32 %v174_v35, %v147_v40  ;;  %v658_v40 = vld [vmem:[%s1166_s5 + $0xb8] sm:$0xff] }
 0x135   :  { %v183_v48 = vmax.f32 %v175_v44, 0.0  ;;  %v656_v44 = vld [vmem:[%s1166_s5 + $0xa8] sm:$0xff] }
 0x137   :  { %v186_v55 = vmul.f32 %v183_v48, %v918_v50 }
 0x13a   :  { %v176_v36 = vpop.f32.mrf.mxu1 }
 0x13b   :  { %v177_v41 = vadd.f32 %v176_v36, %v148_v38  ;;  %v659_v36 = vld [vmem:[%s1166_s5 + $0xc0] sm:$0xff] }
 0x13c   :  { %313 = vmatpush.msra.mxu3 %v659_v36 }
 0x13d   :  { %v184_v46 = vmax.f32 %v177_v41, 0.0 }
 0x13e   :  { %314 = vmatpush.msra.mxu3 %v658_v40 }
 0x13f   :  { %v187_v52 = vmul.f32 %v184_v46, %v916_v49  ;;  %v655_v46 = vld [vmem:[%s1166_s5 + $0xa0] sm:$0xff] }
 0x141   :  { %v189_v56 = vpack.c.bf16 %v187_v52, %v186_v55  ;;  %v651_v55 = vld [vmem:[%s1166_s5 + $0x80] sm:$0xff] }
 0x142   :  { %v179_v42 = vpop.f32.mrf.mxu1 }
 0x143   :  { %v180_v43 = vadd.f32 %v179_v42, %v149_v39  ;;  %v657_v42 = vld [vmem:[%s1166_s5 + $0xb0] sm:$0xff] }
 0x144   :  { %315 = vmatpush.msra.mxu3 %v657_v42 }
 0x145   :  { %v185_v45 = vmax.f32 %v180_v43, 0.0 }
 0x146   :  { %316 = vmatpush.msra.mxu3 %v656_v44 }
 0x147   :  { %v188_v47 = vmul.f32 %v185_v45, %v913_v37 }
 0x148   :  { %317 = vmatpush.msra.mxu3 %v655_v46 }
 0x149   :  { %v190_v51 = vpack.c.bf16 %v188_v47, %v188_v47  ;;  %v654_v47 = vld [vmem:[%s1166_s5 + $0x98] sm:$0xff] }
 0x14a   :  { %v181_v53 = vpop.f32.mrf.mxu1  ;;  %318 = vmatpush.msra.mxu3 %v654_v47 }
 0x14b   :  { %v212_v54 = vsel %vm210_vm1, %v190_v51, 0  ;;  %v653_v51 = vld [vmem:[%s1166_s5 + $0x90] sm:$0xff]  ;;  %v652_v53 = vld [vmem:[%s1166_s5 + $0x88] sm:$0xff] }
 0x14c   :  { %220 = vmatpush.bf16.msra.mxu2 %v212_v54  ;;  %319 = vmatpush.msra.mxu3 %v653_v51 }
 0x14e   :  { %320 = vmatpush.msra.mxu3 %v652_v53 }
 0x150   :  { %221 = vmatpush.bf16.msra.mxu2 %v189_v56  ;;  %321 = vmatpush.msra.mxu3 %v651_v55 }
 0x153   :  { %650 = vmatmul.msk.bf16.vlgmr.msra.gmra.mxu2 %vm206_vm2, %v926_v57 }
 0x1d6   :  { %v223_v62 = vpop.f32.mrf.mxu2 }
 0x1d7   :  { %v224_v8 = vadd.f32 %v223_v62, %v199_v5 }
 0x1de   :  { %v225_v7 = vpop.f32.mrf.mxu2 }
 0x1df   :  { %v226_v9 = vadd.f32 %v225_v7, %v200_v6 }
 0x1e1   :  { %v228_v11 = vadd.f32 %v226_v9, %v224_v8 }
 0x1e3   :  { %v229_v12 = vrot.slane %v228_v11, 4 }
 0x1e5   :  { %v230_v15 = vadd.f32 %v229_v12, %v228_v11 }
 0x1e7   :  { %v231_v17 = vrot.slane %v230_v15, 2 }
 0x1e9   :  { %v232_v20 = vadd.f32 %v231_v17, %v230_v15 }
 0x1eb   :  { %v233_v24 = vrot.slane %v232_v20, 1 }
 0x1ed   :  { %v234_v27 = vadd.f32 %v233_v24, %v232_v20 }
 0x1ef   :  { %v242_v29 = vmul.f32 %v954_v26, %v234_v27  ;;  %v333_v27 = vld [vmem:[#allocation3 + $0x28] sm:$0xff] }
 0x1f1   :  { %v243_v33 = vsub.f32 %v224_v8, %v242_v29  ;;  %v244_v35 = vsub.f32 %v226_v9, %v242_v29  ;;  %v694_v8 = vld [vmem:[%s1171_s10] ss:$0 sm:$0xff] }
 0x1f3   :  { %v245_v38 = vmul.f32 %v243_v33, %v243_v33  ;;  %v246_v39 = vmul.f32 %v244_v35, %v244_v35 }
 0x1f5   :  { %v247_v41 = vadd.f32 %v246_v39, %v245_v38 }
 0x1f7   :  { %v248_v43 = vrot.slane %v247_v41, 4 }
 0x1f9   :  { %v249_v45 = vadd.f32 %v248_v43, %v247_v41 }
 0x1fb   :  { %v250_v48 = vrot.slane %v249_v45, 2 }
 0x1fd   :  { %v251_v52 = vadd.f32 %v250_v48, %v249_v45  ;;  %v696_v45 = vld [vmem:[%s1168_s7 + $0x1] ss:$0 sm:$0xff] }
 0x1ff   :  { %v252_v54 = vrot.slane %v251_v52, 1 }
 0x201   :  { %v253_v56 = vadd.f32 %v252_v54, %v251_v52 }
 0x203   :  { %v254_v58 = vmul.f32 %v253_v56, %v954_v26 }
 0x205   :  { %v255_v59 = vadd.f32 1e-05, %v254_v58  ;;  %v493_v58 = vld [vmem:[%s1173_s12 + $0x78] sm:$0xff] }
 0x206   :  { %494 = vmatpush.msrb.mxu0 %v493_v58 }
 0x207   :  { %702 = vrsqrt.f32 %v255_v59  ;;  %vm262_vm5 = vweird.f32 %v255_v59 }
 0x20d   :  { %v703_v60 = vpop.eup %702 }
 0x20e   :  { %v257_v61 = vmul.f32 %v703_v60, %v255_v59  ;;  %vm263_vm4 = vweird.f32 %v703_v60 }
 0x20f   :  { %vm264_vm6 = vmor %vm262_vm5, %vm263_vm4 }
 0x210   :  { %v258_v62 = vmul.f32 %v703_v60, %v257_v61  ;;  %v452_v61 = vld [vmem:[%s1172_s11 + $0x68] sm:$0xff] }
 0x212   :  { %v259_v63 = vmul.f32 0.5, %v258_v62  ;;  %v491_v62 = vld [vmem:[%s1173_s12 + $0x68] sm:$0xff] }
 0x214   :  { %v260_v0 = vsub.f32 1.5, %v259_v63 }
 0x216   :  { %v261_v1 = vmul.f32 %v703_v60, %v260_v0  ;;  %v451_v0 = vld [vmem:[%s1172_s11 + $0x60] sm:$0xff] }
 0x218   :  { %v265_v5 = vsel %vm264_vm6, %v703_v60, %v261_v1  ;;  %v490_v1 = vld [vmem:[%s1173_s12 + $0x60] sm:$0xff] }
 0x219   :  { %v266_v6 = vmul.f32 %v265_v5, %v243_v33  ;;  %v267_v7 = vmul.f32 %v265_v5, %v244_v35  ;;  %v450_v5 = vld [vmem:[%s1172_s11 + $0x58] sm:$0xff] }
 0x21b   :  { %v272_v9 = vmul.f32 %v693_v4, %v266_v6  ;;  %v273_v11 = vmul.f32 %v693_v4, %v267_v7  ;;  %v489_v6 = vld [vmem:[%s1173_s12 + $0x58] sm:$0xff] }
 0x21d   :  { %v278_v10 = vadd.f32 %v694_v8, %v272_v9  ;;  %v279_v14 = vadd.f32 %v694_v8, %v273_v11  ;;  %v449_v8 = vld [vmem:[%s1172_s11 + $0x50] sm:$0xff]  ;;  %v448_v11 = vld [vmem:[%s1172_s11 + $0x48] sm:$0xff] }
 0x21e   :  { %v488_v9 = vld [vmem:[%s1173_s12 + $0x50] sm:$0xff] }
 0x21f   :  { %v280_v12 = vmax.f32 %v278_v10, 0.0  ;;  %v281_v15 = vmax.f32 %v279_v14, 0.0  ;;  %v71_v14 = vld [vmem:[%s1163_s2] sm:$0xff]  }
 0x221   :  { %v998_v13 = vadd.f32 %v280_v12, %v878_v21  ;;  %v1002_v16 = vadd.f32 %v281_v15, %v884_v22  ;;  %v487_v12 = vld [vmem:[%s1173_s12 + $0x48] sm:$0xff]  ;;  %v520_v15 = vunpack.c.l.bf16 %v71_v14 }
 0x223   :  { %322 = vmatmul.f32.vlgmr.msra.gmra.mxu3 %v998_v13  ;;  %522 = vxpose.xlu2.b32.start [1/2] (short) (narrow) %v520_v15, 24  ;;  %v699_v15 = vld [vmem:[#allocation2] ss:$0 sm:$0xff] }
 0x22b   :  { %325 = vmatmul.f32.gmra.mxu3 %v1002_v16 }
 0x2a6   :  { %v323_v17 = vpop.f32.mrf.mxu3 }
 0x2a7   :  { %v324_v20 = vadd.f32 %v695_v18, %v323_v17 }
 0x2ae   :  { %v326_v19 = vpop.f32.mrf.mxu3 }
 0x2af   :  { %v327_v23 = vadd.f32 %v695_v18, %v326_v19  ;;  %v447_v19 = vld [vmem:[%s1172_s11 + $0x40] sm:$0xff] }
 0x2b1   :  { %v329_v24 = vpack.c.bf16 %v327_v23, %v324_v20  ;;  %v366_v46 = vadd.f32 %v696_v45, %v327_v23 }
 0x2b3   :  { %341 = vmatpush.bf16.msrb.mxu2 %v329_v24 }
 0x2b6   :  { %668 = vmatmul.msk.bf16.vlgmr.msrb.gmra.mxu2 %vm158_vm0, %v899_v31 }
 0x2c6   :  { %669 = vmatmul.msk.bf16.gmra.mxu2 %vm158_vm0, %v909_v34 }
 0x339   :  { %v343_v21 = vpop.f32.mrf.mxu2 }
 0x33a   :  { %v344_v35 = vadd.f32 %v343_v21, %v331_v28  ;;  %v446_v21 = vld [vmem:[%s1172_s11 + $0x38] sm:$0xff]  ;;  %v484_v28 = vld [vmem:[%s1173_s12 + $0x30] sm:$0xff] }
 0x33c   :  { %v352_v40 = vmax.f32 %v344_v35, 0.0  ;;  %v521_v35 = vunpack.c.h.bf16 %v71_v14  ;;  %v519_v14 = vunpack.c.l.bf16 %v906_v32 }
 0x33e   :  { %v355_v43 = vmul.f32 %v352_v40, %v918_v50  ;;  %523 = vxpose.xlu2.b32.end [2/2] (short) (narrow) %v521_v35, 24 }
 0x341   :  { %v345_v22 = vpop.f32.mrf.mxu2 }
 0x342   :  { %v346_v29 = vadd.f32 %v345_v22, %v332_v25  ;;  %v485_v22 = vld [vmem:[%s1173_s12 + $0x38] sm:$0xff] }
 0x344   :  { %v353_v38 = vmax.f32 %v346_v29, 0.0 }
 0x346   :  { %v356_v31 = vmul.f32 %v353_v38, %v916_v49  ;;  %v368_v49 = vmax.f32 %v366_v46, 0.0  ;;  %v443_v38 = vld [vmem:[%s1172_s11 + $0x20] sm:$0xff] }
 0x347   :  { %v439_v46 = vld [vmem:[%s1172_s11] sm:$0xff] }
 0x348   :  { %v358_v44 = vpack.c.bf16 %v356_v31, %v355_v43  ;;  %v370_v52 = vmul.f32 %v368_v49, %v935_v3  ;;  %v492_v3 = vld [vmem:[%s1173_s12 + $0x70] sm:$0xff]  ;;  %v481_v31 = vld [vmem:[%s1173_s12 + $0x18] sm:$0xff] }
 0x349   :  { %v348_v30 = vpop.f32.mrf.mxu2  ;;  %495 = vmatpush.msrb.mxu0 %v492_v3 }
 0x34a   :  { %v349_v33 = vadd.f32 %v348_v30, %v333_v27  ;;  %v445_v27 = vld [vmem:[%s1172_s11 + $0x30] sm:$0xff]  ;;  %v444_v30 = vld [vmem:[%s1172_s11 + $0x28] sm:$0xff] }
 0x34b   :  { %496 = vmatpush.msrb.mxu0 %v491_v62 }
 0x34c   :  { %v354_v36 = vmax.f32 %v349_v33, 0.0  ;;  %v483_v33 = vld [vmem:[%s1173_s12 + $0x28] sm:$0xff] }
 0x34d   :  { %497 = vmatpush.msrb.mxu0 %v490_v1 }
 0x34e   :  { %v357_v39 = vmul.f32 %v354_v36, %v913_v37  ;;  %v365_v37 = vadd.f32 %v696_v45, %v324_v20  ;;  %v486_v20 = vld [vmem:[%s1173_s12 + $0x40] sm:$0xff]  ;;  %v479_v45 = vld [vmem:[%s1173_s12 + $0x8] sm:$0xff] }
 0x34f   :  { %498 = vmatpush.msrb.mxu0 %v489_v6 }
 0x350   :  { %v359_v41 = vpack.c.bf16 %v357_v39, %v357_v39  ;;  %v367_v48 = vmax.f32 %v365_v37, 0.0  ;;  %v482_v39 = vld [vmem:[%s1173_s12 + $0x20] sm:$0xff] }
 0x351   :  { %v350_v42 = vpop.f32.mrf.mxu2  ;;  %499 = vmatpush.msrb.mxu0 %v488_v9  ;;  %v68_v9 = vld [vmem:[%s1162_s1] sm:$0xff]  }
 0x352   :  { %v372_v34 = vsel %vm210_vm1, %v359_v41, 0  ;;  %v369_v51 = vmul.f32 %v367_v48, %v933_v2  ;;  %v453_v2 = vld [vmem:[%s1172_s11 + $0x70] sm:$0xff]  ;;  %v442_v41 = vld [vmem:[%s1172_s11 + $0x18] sm:$0xff] }
 0x353   :  { %380 = vmatpush.bf16.msrb.mxu1 %v372_v34  ;;  %500 = vmatpush.msrb.mxu0 %v487_v12  ;;  %v441_v42 = vld [vmem:[%s1172_s11 + $0x10] sm:$0xff] }
 0x354   :  { %v480_v34 = vld [vmem:[%s1173_s12 + $0x10] sm:$0xff] }
 0x355   :  { %501 = vmatpush.msrb.mxu0 %v486_v20 }
 0x357   :  { %381 = vmatpush.bf16.msrb.mxu1 %v358_v44  ;;  %502 = vmatpush.msrb.mxu0 %v485_v22  ;;  %v440_v44 = vld [vmem:[%s1172_s11 + $0x8] sm:$0xff] }
 0x359   :  { %503 = vmatpush.msrb.mxu0 %v484_v28 }
 0x35a   :  { %671 = vmatmul.msk.bf16.vlgmr.msrb.gmra.mxu1 %vm206_vm2, %v926_v57  ;;  %v454_v57 = vld [vmem:[%s1172_s11 + $0x78] sm:$0xff] }
 0x35b   :  { %455 = vmatpush.msra.mxu2 %v454_v57  ;;  %504 = vmatpush.msrb.mxu0 %v483_v33  ;;  %v697_v57 = vld [vmem:[%s1170_s9 + $0x1] ss:$0 sm:$0xff] }
 0x35d   :  { %456 = vmatpush.msra.mxu2 %v453_v2  ;;  %505 = vmatpush.msrb.mxu0 %v482_v39  ;;  %v698_v2 = vld [vmem:[%s1171_s10 + $0x1] ss:$0 sm:$0xff] }
 0x35f   :  { %457 = vmatpush.msra.mxu2 %v452_v61  ;;  %506 = vmatpush.msrb.mxu0 %v481_v31 }
 0x361   :  { %458 = vmatpush.msra.mxu2 %v451_v0  ;;  %507 = vmatpush.msrb.mxu0 %v480_v34 }
 0x363   :  { %459 = vmatpush.msra.mxu2 %v450_v5  ;;  %508 = vmatpush.msrb.mxu0 %v479_v45 }
 0x365   :  { %460 = vmatpush.msra.mxu2 %v449_v8 }
 0x367   :  { %461 = vmatpush.msra.mxu2 %v448_v11 }
 0x369   :  { %462 = vmatpush.msra.mxu2 %v447_v19 }
 0x36b   :  { %463 = vmatpush.msra.mxu2 %v446_v21 }
 0x36d   :  { %464 = vmatpush.msra.mxu2 %v445_v27 }
 0x36f   :  { %465 = vmatpush.msra.mxu2 %v444_v30 }
 0x371   :  { %466 = vmatpush.msra.mxu2 %v443_v38 }
 0x373   :  { %467 = vmatpush.msra.mxu2 %v442_v41 }
 0x375   :  { %468 = vmatpush.msra.mxu2 %v441_v42 }
 0x377   :  { %469 = vmatpush.msra.mxu2 %v440_v44 }
 0x379   :  { %470 = vmatpush.msra.mxu2 %v439_v46 }
 0x3cf   :  { %v538_v6 = vpop.trf.xlu2 }
 0x3d7   :  { %v383_v47 = vpop.f32.mrf.mxu1  ;;  %v539_v11 = vpop.trf.xlu2 }
 0x3d8   :  { %v384_v53 = vadd.f32 %v383_v47, %v369_v51  ;;  %v478_v47 = vld [vmem:[%s1173_s12] sm:$0xff] }
 0x3d9   :  { %509 = vmatpush.msrb.mxu0 %v478_v47 }
 0x3df   :  { %v385_v50 = vpop.f32.mrf.mxu1  ;;  %v540_v12 = vpop.trf.xlu2 }
 0x3e0   :  { %v386_v54 = vadd.f32 %v385_v50, %v370_v52 }
 0x3e2   :  { %v388_v55 = vadd.f32 %v386_v54, %v384_v53 }
 0x3e4   :  { %v389_v56 = vrot.slane %v388_v55, 4 }
 0x3e6   :  { %v390_v59 = vadd.f32 %v389_v56, %v388_v55 }
 0x3e8   :  { %v391_v60 = vrot.slane %v390_v59, 2 }
 0x3ea   :  { %v392_v63 = vadd.f32 %v391_v60, %v390_v59 }
 0x3ec   :  { %v393_v4 = vrot.slane %v392_v63, 1 }
 0x3ee   :  { %v394_v7 = vadd.f32 %v393_v4, %v392_v63 }
 0x3f0   :  { %v395_v10 = vmul.f32 %v394_v7, %v954_v26 }
 0x3f2   :  { %v1069_v17 = vsub.f32 %v384_v53, %v395_v10  ;;  %v1071_v18 = vsub.f32 %v386_v54, %v395_v10  ;;  %v517_v10 = vunpack.c.l.bf16 %v68_v9 }
 0x3f4   :  { %v398_v23 = vmul.f32 %v1069_v17, %v1069_v17  ;;  %v399_v24 = vmul.f32 %v1071_v18, %v1071_v18 }
 0x3f6   :  { %v400_v25 = vadd.f32 %v399_v24, %v398_v23 }
 0x3f8   :  { %v401_v29 = vrot.slane %v400_v25, 4 }
 0x3fa   :  { %v402_v36 = vadd.f32 %v401_v29, %v400_v25 }
 0x3fc   :  { %v403_v40 = vrot.slane %v402_v36, 2 }
 0x3fe   :  { %v404_v43 = vadd.f32 %v403_v40, %v402_v36 }
 0x400   :  { %v405_v37 = vrot.slane %v404_v43, 1 }
 0x402   :  { %v406_v48 = vadd.f32 %v405_v37, %v404_v43 }
 0x404   :  { %v407_v49 = vmul.f32 %v406_v48, %v954_v26 }
 0x406   :  { %v408_v51 = vadd.f32 1e-05, %v407_v49 }
 0x408   :  { %704 = vrsqrt.f32 %v408_v51  ;;  %vm415_vm8 = vweird.f32 %v408_v51 }
 0x40e   :  { %v705_v52 = vpop.eup %704 }
 0x40f   :  { %v410_v50 = vmul.f32 %v705_v52, %v408_v51  ;;  %vm416_vm7 = vweird.f32 %v705_v52 }
 0x410   :  { %vm417_vm9 = vmor %vm415_vm8, %vm416_vm7 }
 0x411   :  { %v411_v53 = vmul.f32 %v705_v52, %v410_v50 }
 0x413   :  { %v412_v54 = vmul.f32 0.5, %v411_v53 }
 0x415   :  { %v413_v55 = vsub.f32 1.5, %v412_v54 }
 0x417   :  { %v414_v56 = vmul.f32 %v705_v52, %v413_v55 }
 0x419   :  { %v418_v58 = vsel %vm417_vm9, %v705_v52, %v414_v56 }
 0x41a   :  { %v419_v59 = vmul.f32 %v418_v58, %v1069_v17  ;;  %v420_v26 = vmul.f32 %v418_v58, %v1071_v18 }
 0x41c   :  { %v426_v3 = vmul.f32 %v697_v57, %v419_v59  ;;  %v427_v61 = vmul.f32 %v697_v57, %v420_v26 }
 0x41e   :  { %v433_v60 = vadd.f32 %v698_v2, %v426_v3  ;;  %v434_v0 = vadd.f32 %v698_v2, %v427_v61 }
 0x420   :  { %v435_v62 = vmax.f32 %v433_v60, 0.0  ;;  %v436_v1 = vmax.f32 %v434_v0, 0.0 }
 0x422   :  { %v437_v63 = vadd.f32 %v435_v62, %v998_v13  ;;  %v438_v4 = vadd.f32 %v436_v1, %v1002_v16  ;;  %v518_v16 = vunpack.c.h.bf16 %v68_v9 }
 0x424   :  { %471 = vmatmul.f32.vlgmr.msra.gmra.mxu2 %v437_v63  ;;  %510 = vmatmul.f32.vlgmr.msrb.gmra.mxu0 %v437_v63 }
 0x42c   :  { %474 = vmatmul.f32.gmra.mxu2 %v438_v4  ;;  %513 = vmatmul.f32.gmra.mxu0 %v438_v4 }
 0x4a1   :  { %v511_v5 = vpop.f32.mrf.mxu0 }
 0x4a7   :  { %v472_v7 = vpop.f32.mrf.mxu2 }
 0x4a9   :  { %v514_v8 = vpop.f32.mrf.mxu0 }
 0x4aa   :  { %577 = vmatpush.msrb.mxu3 %v514_v8 }
 0x4ac   :  { %578 = vmatpush.msrb.mxu3 %v511_v5 }
 0x4ad   :  { %674 = vmatmul.msk.f32.vlgmr.msrb.gmra.mxu3 %vm158_vm0, %v538_v6 }
 0x4af   :  { %v475_v13 = vpop.f32.mrf.mxu2 }
 0x4b0   :  { %612 = vmatpush.msra.mxu1 %v475_v13 }
 0x4b2   :  { %613 = vmatpush.msra.mxu1 %v472_v7 }
 0x4b3   :  { %677 = vmatmul.msk.f32.vlgmr.msra.gmra.mxu1 %vm158_vm0, %v517_v10 }
 0x4b5   :  { %675 = vmatmul.msk.f32.gmra.mxu3 %vm158_vm0, %v539_v11 }
 0x4bb   :  { %678 = vmatmul.msk.f32.gmra.mxu1 %vm158_vm0, %v518_v16 }
 0x4bd   :  { %676 = vmatmul.msk.f32.gmra.mxu3 %vm158_vm0, %v540_v12 }
 0x4c3   :  { %679 = vmatmul.msk.f32.gmra.mxu1 %vm158_vm0, %v519_v14 }
 0x530   :  { %v580_v17 = vpop.f32.mrf.mxu3  ;;  %v615_v18 = vpop.f32.mrf.mxu1 }
 0x531   :  { %v616_v19 = vadd.f32 %v615_v18, %v580_v17 }
 0x533   :  { %v628_v20 = vadd.f32 %v699_v15, %v616_v19 }
 0x535   :  { %632 = vst.msk [vmem:[%s1175_s14] sm:$0xff] %vm631_vm10, %v628_v20 }
 0x538   :  { %v583_v23 = vpop.f32.mrf.mxu3  ;;  %v618_v24 = vpop.f32.mrf.mxu1 }
 0x539   :  { %v619_v21 = vadd.f32 %v618_v24, %v583_v23 }
 0x53b   :  { %v629_v22 = vadd.f32 %v699_v15, %v619_v21 }
 0x53d   :  { %633 = vst.msk [vmem:[%s1175_s14 + $0x8] sm:$0xff] %vm631_vm10, %v629_v22 }
 0x540   :  { %v586_v32 = vpop.f32.mrf.mxu3  ;;  %v621_v25 = vpop.f32.mrf.mxu1 }
 0x541   :  { %v622_v27 = vadd.f32 %v621_v25, %v586_v32 }
 0x543   :  { %v630_v28 = vadd.f32 %v699_v15, %v622_v27 }
 0x545   :  { %634 = vst.msk [vmem:[%s1175_s14 + $0x10] sm:$0xff] %vm631_vm10, %v630_v28 }
 0x546   :  { %639 = vsyncpa [#allocation4], 1 }

</bundles_post_ra>
